<compile_context>
chip_gen: v6e
topology: v6e:2x2x1
jax: 0.10.0
libtpu: 0.0.40
codegen_flags: <defaults>
</compile_context>

<pallas_src>
import functools

import jax
import jax.numpy as jnp
from jax import lax
from jax.experimental import pallas as pl
from jax.experimental.pallas import tpu as pltpu


def _round_up(x, m):
    return ((x + m - 1) // m) * m


def _vmem_capacity_bytes():
    """Physical VMEM of the local chip; fall back to the v7x minimum (64 MiB)."""
    try:
        return int(pltpu.get_tpu_info().vmem_capacity_bytes)
    except Exception:
        return 64 << 20


def _choose_group(B, C):
    """How many batch elements to pack into one block (must divide B)."""
    if B <= 1 or C >= 64:
        return 1
    g = min(max(1, 64 // C), B, max(1, B // 2))   # keep >=2 batch programs
    while g > 1 and B % g:
        g -= 1
    return g


def _plan(B, C, T, itemsize, t_tile=None, group=None):
    """Pick (G, t_eff, vmem_limit_bytes) for this problem size / chip."""
    G = _choose_group(B, C) if group is None else max(1, min(int(group), B))
    while G > 1 and B % G:        # keep the batch-slab dim free of partial blocks
        G -= 1
    rows = G * C
    vmem = _vmem_capacity_bytes()
    # Live bytes per time column: double-buffered in + out tiles at the I/O
    # dtype plus ~6 f32-sized temporaries inside the kernel body.
    per_col = rows * (4 * itemsize + 6 * 4)
    if t_tile is None:
        t_eff = (int(vmem * 0.45) // per_col) // 128 * 128
        t_eff = min(t_eff, 16384)
    else:
        t_eff = _round_up(int(t_tile), 128)
    t_eff = max(128, min(t_eff, _round_up(T, 128)))
    need = per_col * t_eff + (2 << 20)
    vmem_limit = int(min(int(vmem * 0.9), max(32 << 20, need)))
    return G, t_eff, vmem_limit


def _cln_kernel(x_ref, gain_ref, bias_ref, o_ref, carry_ref,
                *, eps, channel, t_tile, group):
    t_idx = pl.program_id(1)

    # Reset the running (sum, sum-of-squares) carries at the first time tile
    # of each batch block.  This also flushes any garbage picked up from the
    # previous batch block's masked tail tile.
    @pl.when(t_idx == 0)
    def _():
        carry_ref[...] = jnp.zeros_like(carry_ref)

    x = x_ref[...].astype(jnp.float32)                        # (G, C, tT)

    # Per-(batch-slab, time-step) channel sums.
    step_sum = jnp.sum(x, axis=1)                             # (G, tT)
    step_pow = jnp.sum(x * x, axis=1)                         # (G, tT)
    stats = jnp.concatenate([step_sum, step_pow], axis=0)     # (2G, tT)

    # Fused inclusive prefix sum along the lane (time) axis: one Hillis-Steele
    # roll/where/add chain handles all 2G rows in the same vregs; rolls go to
    # the XLU slot.  O(tT log tT) on a few rows only.
    # TODO(synk): a two-level (intra-vreg + per-segment) scan would avoid the
    # cross-vreg rolls for shifts >= 128; kept flat for simplicity/safety.
    lane = lax.broadcasted_iota(jnp.int32, (1, t_tile), 1)
    cum = stats
    shift = 1
    while shift < t_tile:
        cum = cum + jnp.where(lane >= shift,
                              pltpu.roll(cum, shift, axis=1),
                              0.0)
        shift *= 2

    # Add carries from previous time tiles, then update them with this tile's
    # totals.  (A partial tail tile pollutes the carry with garbage lanes, but
    # it is reset at t_idx == 0 before it is ever read again.)
    carry = carry_ref[...]                                    # (2G, 1)
    cum = cum + carry
    carry_ref[...] = carry + jnp.sum(stats, axis=1, keepdims=True)

    cum_sum = cum[:group]                                     # (G, tT)
    cum_pow = cum[group:]                                     # (G, tT)

    # entry_cnt = channel * (global_t + 1), in f32 exactly like the PyTorch
    # reference (exact up to counts of 2^24).  Exact reciprocal on the small
    # stats rows only; the (C, T)-wide divide is gone.
    pos = lane + (t_idx * t_tile + 1)                         # (1, tT) int32
    inv_cnt = 1.0 / (pos.astype(jnp.float32) * jnp.float32(channel))

    cum_mean = cum_sum * inv_cnt                              # (G, tT)
    # var = E[x^2] - E[x]^2 (same algebra as the module), clamped at 0 to
    # guard rounding cancellation before rsqrt.
    cum_var = jnp.maximum(cum_pow * inv_cnt - cum_mean * cum_mean, 0.0)
    inv_std = lax.rsqrt(cum_var + jnp.float32(eps))           # EUP, rows only

    gain = gain_ref[...].astype(jnp.float32)                  # (C, 1)
    bias = bias_ref[...].astype(jnp.float32)
    xn = (x - cum_mean[:, None, :]) * inv_std[:, None, :]     # (G, C, tT)
    o_ref[...] = (xn * gain[None, :, :] + bias[None, :, :]).astype(o_ref.dtype)


def cln_forward(x, gain, bias, eps=1e-8, t_tile=None, group=None):
    """x: (B, C, T); gain/bias broadcast over batch and time."""
    B, C, T = x.shape
    gain = jnp.asarray(gain, x.dtype).reshape(C, 1)
    bias = jnp.asarray(bias, x.dtype).reshape(C, 1)

    itemsize = jnp.dtype(x.dtype).itemsize
    G, t_eff, vmem_limit = _plan(B, C, T, itemsize, t_tile=t_tile, group=group)

    grid = (pl.cdiv(B, G), pl.cdiv(T, t_eff))
    kernel = functools.partial(_cln_kernel, eps=eps, channel=C,
                               t_tile=t_eff, group=G)

    return pl.pallas_call(
        kernel,
        out_shape=jax.ShapeDtypeStruct((B, C, T), x.dtype),
        grid_spec=pltpu.PrefetchScalarGridSpec(
            num_scalar_prefetch=0,
            grid=grid,
            in_specs=[
                # NOTE: add pipeline_mode=pl.Buffered(3) here only if a
                # profile shows DMA gaps across the sequential T axis.
                pl.BlockSpec((G, C, t_eff), lambda b, t: (b, 0, t)),
                pl.BlockSpec((C, 1), lambda b, t: (0, 0)),
                pl.BlockSpec((C, 1), lambda b, t: (0, 0)),
            ],
            out_specs=pl.BlockSpec((G, C, t_eff), lambda b, t: (b, 0, t)),
            scratch_shapes=[
                pltpu.VMEM((2 * G, 1), jnp.float32),   # running [sum; pow] carry
            ],
        ),
        compiler_params=pltpu.CompilerParams(
            # Batch axis parallel (megacore on v7x); time axis must stay
            # sequential because of the carried running sums.
            dimension_semantics=("parallel", "arbitrary"),
            vmem_limit_bytes=vmem_limit,
        ),
    )(x, gain, bias)


def cln_reference(x, gain, bias, eps=1e-8):
    """Pure-JAX reference mirroring the PyTorch forward."""
    B, C, T = x.shape
    gain = jnp.asarray(gain, x.dtype).reshape(C, 1)
    bias = jnp.asarray(bias, x.dtype).reshape(C, 1)
    step_sum = x.sum(axis=1)                   # (B, T)
    step_pow_sum = (x * x).sum(axis=1)         # (B, T)
    cum_sum = jnp.cumsum(step_sum, axis=1)
    cum_pow_sum = jnp.cumsum(step_pow_sum, axis=1)
    entry_cnt = jnp.arange(C, C * (T + 1), C, dtype=x.dtype)[None, :]
    cum_mean = cum_sum / entry_cnt
    cum_var = (cum_pow_sum - 2 * cum_mean * cum_sum) / entry_cnt + cum_mean**2
    cum_std = jnp.sqrt(cum_var + eps)
    xn = (x - cum_mean[:, None, :]) / cum_std[:, None, :]
    return xn * gain[None, :, :] + bias[None, :, :]


if __name__ == "__main__":
    root = jax.random.PRNGKey(0)
    k1, k2, k3, k4, k5 = jax.random.split(root, 5)

    # Case 1: module-sized small shapes (batch=2, channel=4, time=16),
    # parameters at their nn.Parameter init values (ones / zeros).  Exercises
    # a single partial time tile (t_eff=128 > T=16) with no padding.
    B, C, T = 2, 4, 16
    x = jax.random.normal(k1, (B, C, T), dtype=jnp.float32)
    gain = jnp.ones((1, C, 1), dtype=jnp.float32)
    bias = jnp.zeros((1, C, 1), dtype=jnp.float32)
    out = jax.block_until_ready(cln_forward(x, gain, bias, eps=1e-8))
    ref = cln_reference(x, gain, bias, eps=1e-8)
    assert out.shape == (B, C, T)
    assert jnp.allclose(out, ref, atol=2e-5, rtol=2e-4), \
        float(jnp.max(jnp.abs(out - ref)))

    # Case 2: batch-packing (G=2), unaligned channels (6) and time (300 ->
    # 3 tiles of 128 with a masked 44-lane tail), multi-tile running carry.
    B2, C2, T2 = 4, 6, 300
    x2 = jax.random.normal(k2, (B2, C2, T2), dtype=jnp.float32)
    g2 = 0.5 + jax.random.uniform(k3, (1, C2, 1), dtype=jnp.float32)
    b2 = 0.1 * jax.random.normal(k4, (1, C2, 1), dtype=jnp.float32)
    out2 = jax.block_until_ready(
        cln_forward(x2, g2, b2, eps=1e-8, t_tile=128, group=2))
    ref2 = cln_reference(x2, g2, b2, eps=1e-8)
    assert out2.shape == (B2, C2, T2)
    assert jnp.allclose(out2, ref2, atol=2e-5, rtol=2e-4), \
        float(jnp.max(jnp.abs(out2 - ref2)))

    # Case 3: default planner (auto t_eff / vmem_limit), larger channel count,
    # unaligned time tail inside a single wide tile.
    B3, C3, T3 = 2, 64, 700
    x3 = jax.random.normal(k5, (B3, C3, T3), dtype=jnp.float32)
    g3 = jnp.ones((1, C3, 1), dtype=jnp.float32)
    b3 = jnp.zeros((1, C3, 1), dtype=jnp.float32)
    out3 = jax.block_until_ready(cln_forward(x3, g3, b3, eps=1e-8))
    ref3 = cln_reference(x3, g3, b3, eps=1e-8)
    assert out3.shape == (B3, C3, T3)
    assert jnp.allclose(out3, ref3, atol=1e-4, rtol=1e-3), \
        float(jnp.max(jnp.abs(out3 - ref3)))

    print("KERNEL_OK")
</pallas_src>

<mosaic_0001>
module attributes {stable_mosaic.version = 11 : i64} {
  func.func @_cln_kernel(%arg0: i32, %arg1: i32, %arg2: memref<1x4x128xf32, #tpu.memory_space<vmem>>, %arg3: memref<4x1xf32, #tpu.memory_space<vmem>>, %arg4: memref<4x1xf32, #tpu.memory_space<vmem>>, %arg5: memref<1x4x128xf32, #tpu.memory_space<vmem>>, %arg6: memref<2x1xf32, #tpu.memory_space<vmem>>) attributes {dimension_semantics = [#tpu.dimension_semantics<parallel>, #tpu.dimension_semantics<arbitrary>], iteration_bounds = array<i64: 2, 1>, scalar_prefetch = 0 : i64, scratch_operands = 1 : i64, tpu.core_type = #tpu.core_type<tc>, window_params = [{transform_indices = @transform_0, window_bounds = array<i64: 1, 4, 128>}, {pipeline_mode = #tpu.pipeline_mode<synchronous>, transform_indices = @transform_1, window_bounds = array<i64: 4, 1>}, {pipeline_mode = #tpu.pipeline_mode<synchronous>, transform_indices = @transform_2, window_bounds = array<i64: 4, 1>}, {transform_indices = @transform_3, window_bounds = array<i64: 1, 4, 128>}]} {
    %c0_i32 = arith.constant 0 : i32
    %0 = arith.cmpi eq, %arg1, %c0_i32 : i32
    %1 = arith.extui %0 : i1 to i32
    %c0_i32_0 = arith.constant 0 : i32
    %2 = arith.cmpi ne, %1, %c0_i32_0 : i32
    scf.if %2 {
      %cst_35 = arith.constant 0.000000e+00 : f32
      %107 = vector.broadcast %cst_35 : f32 to vector<2x1xf32>
      %c0_36 = arith.constant 0 : index
      %c0_37 = arith.constant 0 : index
      %108 = vector.load %arg6[%c0_36, %c0_37] : memref<2x1xf32, #tpu.memory_space<vmem>>, vector<2x1xf32>
      tpu.vector_store %arg6[%c0_36, %c0_37], %107 {strides = array<i32>} : memref<2x1xf32, #tpu.memory_space<vmem>>, vector<2x1xf32>,
    } else {
    }
    %c0 = arith.constant 0 : index
    %c0_1 = arith.constant 0 : index
    %c0_2 = arith.constant 0 : index
    %3 = vector.load %arg2[%c0, %c0_1, %c0_2] : memref<1x4x128xf32, #tpu.memory_space<vmem>>, vector<1x4x128xf32>
    %cst = arith.constant dense<0.000000e+00> : vector<1x128xf32>
    %4 = vector.multi_reduction <add>, %3, %cst [1] : vector<1x4x128xf32> to vector<1x128xf32>
    %5 = arith.mulf %3, %3 : vector<1x4x128xf32>
    %cst_3 = arith.constant dense<0.000000e+00> : vector<1x128xf32>
    %6 = vector.multi_reduction <add>, %5, %cst_3 [1] : vector<1x4x128xf32> to vector<1x128xf32>
    %7 = tpu.concatenate %4, %6 in 0 : vector<1x128xf32>, vector<1x128xf32> -> vector<2x128xf32>
    %8 = tpu.iota {dimensions = array<i32: 1>} : vector<1x128xi32>
    %c1_i32 = arith.constant 1 : i32
    %9 = vector.broadcast %c1_i32 : i32 to vector<1x128xi32>
    %10 = arith.cmpi sge, %8, %9 : vector<1x128xi32>
    %c1_i32_4 = arith.constant 1 : i32
    %11 = tpu.dynamic_rotate %7 by %c1_i32_4 dim 1 : vector<2x128xf32>, i32 -> vector<2x128xf32>
    %cst_5 = arith.constant 0.000000e+00 : f32
    %12 = vector.shape_cast %10 : vector<1x128xi1> to vector<1x128xi1>
    %13 = vector.broadcast %12 : vector<1x128xi1> to vector<2x128xi1>
    %14 = vector.broadcast %cst_5 : f32 to vector<2x128xf32>
    %15 = arith.select %13, %11, %14 : vector<2x128xi1>, vector<2x128xf32>
    %16 = arith.addf %7, %15 : vector<2x128xf32>
    %c2_i32 = arith.constant 2 : i32
    %17 = vector.broadcast %c2_i32 : i32 to vector<1x128xi32>
    %18 = arith.cmpi sge, %8, %17 : vector<1x128xi32>
    %c2_i32_6 = arith.constant 2 : i32
    %19 = tpu.dynamic_rotate %16 by %c2_i32_6 dim 1 : vector<2x128xf32>, i32 -> vector<2x128xf32>
    %cst_7 = arith.constant 0.000000e+00 : f32
    %20 = vector.shape_cast %18 : vector<1x128xi1> to vector<1x128xi1>
    %21 = vector.broadcast %20 : vector<1x128xi1> to vector<2x128xi1>
    %22 = vector.broadcast %cst_7 : f32 to vector<2x128xf32>
    %23 = arith.select %21, %19, %22 : vector<2x128xi1>, vector<2x128xf32>
    %24 = arith.addf %16, %23 : vector<2x128xf32>
    %c4_i32 = arith.constant 4 : i32
    %25 = vector.broadcast %c4_i32 : i32 to vector<1x128xi32>
    %26 = arith.cmpi sge, %8, %25 : vector<1x128xi32>
    %c4_i32_8 = arith.constant 4 : i32
    %27 = tpu.dynamic_rotate %24 by %c4_i32_8 dim 1 : vector<2x128xf32>, i32 -> vector<2x128xf32>
    %cst_9 = arith.constant 0.000000e+00 : f32
    %28 = vector.shape_cast %26 : vector<1x128xi1> to vector<1x128xi1>
    %29 = vector.broadcast %28 : vector<1x128xi1> to vector<2x128xi1>
    %30 = vector.broadcast %cst_9 : f32 to vector<2x128xf32>
    %31 = arith.select %29, %27, %30 : vector<2x128xi1>, vector<2x128xf32>
    %32 = arith.addf %24, %31 : vector<2x128xf32>
    %c8_i32 = arith.constant 8 : i32
    %33 = vector.broadcast %c8_i32 : i32 to vector<1x128xi32>
    %34 = arith.cmpi sge, %8, %33 : vector<1x128xi32>
    %c8_i32_10 = arith.constant 8 : i32
    %35 = tpu.dynamic_rotate %32 by %c8_i32_10 dim 1 : vector<2x128xf32>, i32 -> vector<2x128xf32>
    %cst_11 = arith.constant 0.000000e+00 : f32
    %36 = vector.shape_cast %34 : vector<1x128xi1> to vector<1x128xi1>
    %37 = vector.broadcast %36 : vector<1x128xi1> to vector<2x128xi1>
    %38 = vector.broadcast %cst_11 : f32 to vector<2x128xf32>
    %39 = arith.select %37, %35, %38 : vector<2x128xi1>, vector<2x128xf32>
    %40 = arith.addf %32, %39 : vector<2x128xf32>
    %c16_i32 = arith.constant 16 : i32
    %41 = vector.broadcast %c16_i32 : i32 to vector<1x128xi32>
    %42 = arith.cmpi sge, %8, %41 : vector<1x128xi32>
    %c16_i32_12 = arith.constant 16 : i32
    %43 = tpu.dynamic_rotate %40 by %c16_i32_12 dim 1 : vector<2x128xf32>, i32 -> vector<2x128xf32>
    %cst_13 = arith.constant 0.000000e+00 : f32
    %44 = vector.shape_cast %42 : vector<1x128xi1> to vector<1x128xi1>
    %45 = vector.broadcast %44 : vector<1x128xi1> to vector<2x128xi1>
    %46 = vector.broadcast %cst_13 : f32 to vector<2x128xf32>
    %47 = arith.select %45, %43, %46 : vector<2x128xi1>, vector<2x128xf32>
    %48 = arith.addf %40, %47 : vector<2x128xf32>
    %c32_i32 = arith.constant 32 : i32
    %49 = vector.broadcast %c32_i32 : i32 to vector<1x128xi32>
    %50 = arith.cmpi sge, %8, %49 : vector<1x128xi32>
    %c32_i32_14 = arith.constant 32 : i32
    %51 = tpu.dynamic_rotate %48 by %c32_i32_14 dim 1 : vector<2x128xf32>, i32 -> vector<2x128xf32>
    %cst_15 = arith.constant 0.000000e+00 : f32
    %52 = vector.shape_cast %50 : vector<1x128xi1> to vector<1x128xi1>
    %53 = vector.broadcast %52 : vector<1x128xi1> to vector<2x128xi1>
    %54 = vector.broadcast %cst_15 : f32 to vector<2x128xf32>
    %55 = arith.select %53, %51, %54 : vector<2x128xi1>, vector<2x128xf32>
    %56 = arith.addf %48, %55 : vector<2x128xf32>
    %c64_i32 = arith.constant 64 : i32
    %57 = vector.broadcast %c64_i32 : i32 to vector<1x128xi32>
    %58 = arith.cmpi sge, %8, %57 : vector<1x128xi32>
    %c64_i32_16 = arith.constant 64 : i32
    %59 = tpu.dynamic_rotate %56 by %c64_i32_16 dim 1 : vector<2x128xf32>, i32 -> vector<2x128xf32>
    %cst_17 = arith.constant 0.000000e+00 : f32
    %60 = vector.shape_cast %58 : vector<1x128xi1> to vector<1x128xi1>
    %61 = vector.broadcast %60 : vector<1x128xi1> to vector<2x128xi1>
    %62 = vector.broadcast %cst_17 : f32 to vector<2x128xf32>
    %63 = arith.select %61, %59, %62 : vector<2x128xi1>, vector<2x128xf32>
    %64 = arith.addf %56, %63 : vector<2x128xf32>
    %c0_18 = arith.constant 0 : index
    %c0_19 = arith.constant 0 : index
    %65 = vector.load %arg6[%c0_18, %c0_19] : memref<2x1xf32, #tpu.memory_space<vmem>>, vector<2x1xf32>
    %66 = vector.broadcast %65 : vector<2x1xf32> to vector<2x128xf32>
    %67 = arith.addf %64, %66 : vector<2x128xf32>
    %cst_20 = arith.constant dense<0.000000e+00> : vector<2xf32>
    %68 = vector.multi_reduction <add>, %7, %cst_20 [1] : vector<2x128xf32> to vector<2xf32>
    %69 = vector.shape_cast %68 : vector<2xf32> to vector<2x1xf32>
    %70 = arith.addf %65, %69 : vector<2x1xf32>
    %c0_21 = arith.constant 0 : index
    %c0_22 = arith.constant 0 : index
    %71 = vector.load %arg6[%c0_21, %c0_22] : memref<2x1xf32, #tpu.memory_space<vmem>>, vector<2x1xf32>
    tpu.vector_store %arg6[%c0_21, %c0_22], %70 {strides = array<i32>} : memref<2x1xf32, #tpu.memory_space<vmem>>, vector<2x1xf32>,
    %72 = vector.extract_strided_slice %67 {offsets = [0, 0], sizes = [1, 128], strides = [1, 1]} : vector<2x128xf32> to vector<1x128xf32>
    %73 = vector.extract_strided_slice %67 {offsets = [1, 0], sizes = [1, 128], strides = [1, 1]} : vector<2x128xf32> to vector<1x128xf32>
    %c128_i32 = arith.constant 128 : i32
    %74 = arith.muli %arg1, %c128_i32 : i32
    %c1_i32_23 = arith.constant 1 : i32
    %75 = arith.addi %74, %c1_i32_23 : i32
    %76 = vector.broadcast %75 : i32 to vector<1x128xi32>
    %77 = arith.addi %8, %76 : vector<1x128xi32>
    %78 = arith.sitofp %77 : vector<1x128xi32> to vector<1x128xf32>
    %cst_24 = arith.constant 4.000000e+00 : f32
    %79 = vector.broadcast %cst_24 : f32 to vector<1x128xf32>
    %80 = arith.mulf %78, %79 : vector<1x128xf32>
    %cst_25 = arith.constant 1.000000e+00 : f32
    %81 = vector.broadcast %cst_25 : f32 to vector<1x128xf32>
    %82 = arith.divf %81, %80 : vector<1x128xf32>
    %83 = arith.mulf %72, %82 : vector<1x128xf32>
    %84 = arith.mulf %73, %82 : vector<1x128xf32>
    %85 = arith.mulf %83, %83 : vector<1x128xf32>
    %86 = arith.subf %84, %85 : vector<1x128xf32>
    %cst_26 = arith.constant 0.000000e+00 : f32
    %87 = vector.broadcast %cst_26 : f32 to vector<1x128xf32>
    %88 = arith.maximumf %86, %87 : vector<1x128xf32>
    %cst_27 = arith.constant 9.99999993E-9 : f32
    %89 = vector.broadcast %cst_27 : f32 to vector<1x128xf32>
    %90 = arith.addf %88, %89 : vector<1x128xf32>
    %91 = math.rsqrt %90 : vector<1x128xf32>
    %c0_28 = arith.constant 0 : index
    %c0_29 = arith.constant 0 : index
    %92 = vector.load %arg3[%c0_28, %c0_29] : memref<4x1xf32, #tpu.memory_space<vmem>>, vector<4x1xf32>
    %c0_30 = arith.constant 0 : index
    %c0_31 = arith.constant 0 : index
    %93 = vector.load %arg4[%c0_30, %c0_31] : memref<4x1xf32, #tpu.memory_space<vmem>>, vector<4x1xf32>
    %94 = vector.shape_cast %83 : vector<1x128xf32> to vector<1x1x128xf32>
    %95 = vector.broadcast %94 : vector<1x1x128xf32> to vector<1x4x128xf32>
    %96 = arith.subf %3, %95 : vector<1x4x128xf32>
    %97 = vector.shape_cast %91 : vector<1x128xf32> to vector<1x1x128xf32>
    %98 = vector.broadcast %97 : vector<1x1x128xf32> to vector<1x4x128xf32>
    %99 = arith.mulf %96, %98 : vector<1x4x128xf32>
    %100 = vector.shape_cast %92 : vector<4x1xf32> to vector<1x4x1xf32>
    %101 = vector.broadcast %100 : vector<1x4x1xf32> to vector<1x4x128xf32>
    %102 = arith.mulf %99, %101 : vector<1x4x128xf32>
    %103 = vector.shape_cast %93 : vector<4x1xf32> to vector<1x4x1xf32>
    %104 = vector.broadcast %103 : vector<1x4x1xf32> to vector<1x4x128xf32>
    %105 = arith.addf %102, %104 : vector<1x4x128xf32>
    %c0_32 = arith.constant 0 : index
    %c0_33 = arith.constant 0 : index
    %c0_34 = arith.constant 0 : index
    %106 = vector.load %arg5[%c0_32, %c0_33, %c0_34] : memref<1x4x128xf32, #tpu.memory_space<vmem>>, vector<1x4x128xf32>
    tpu.vector_store %arg5[%c0_32, %c0_33, %c0_34], %105 {strides = array<i32>} : memref<1x4x128xf32, #tpu.memory_space<vmem>>, vector<1x4x128xf32>,
    return
  }
  func.func @transform_0(%arg0: i32, %arg1: i32) -> (i32, i32, i32) {
    %c0_i32 = arith.constant 0 : i32
    %c0_i32_0 = arith.constant 0 : i32
    return %arg0, %c0_i32, %arg1 : i32, i32, i32
  }
  func.func @transform_1(%arg0: i32, %arg1: i32) -> (i32, i32) {
    %c0_i32 = arith.constant 0 : i32
    %c0_i32_0 = arith.constant 0 : i32
    %c0_i32_1 = arith.constant 0 : i32
    return %c0_i32, %c0_i32_0 : i32, i32
  }
  func.func @transform_2(%arg0: i32, %arg1: i32) -> (i32, i32) {
    %c0_i32 = arith.constant 0 : i32
    %c0_i32_0 = arith.constant 0 : i32
    %c0_i32_1 = arith.constant 0 : i32
    return %c0_i32, %c0_i32_0 : i32, i32
  }
  func.func @transform_3(%arg0: i32, %arg1: i32) -> (i32, i32, i32) {
    %c0_i32 = arith.constant 0 : i32
    %c0_i32_0 = arith.constant 0 : i32
    return %arg0, %c0_i32, %arg1 : i32, i32, i32
  }
}

</mosaic_0001>

<bundles_post_ra>
// kernel: tpu_custom_call.1
= control target key start
LH: loop header
LB: loop body
LE: loop exit
PB: predicated region body
PF: predicated region fallthrough
CT: control target
= control target key end

     0   :  { %8 = vsyncpa [#allocation4], 0  ;;  %s716_s0 = inlined_call_operand.vmem [shape: f32[2,4,16], index: 0, kind: input, shape index: {}]   ;;  %s717_s1 = inlined_call_operand.vmem [shape: f32[4,1], index: 1, kind: input, shape index: {}]   ;;  %s718_s2 = inlined_call_operand.vmem [shape: f32[4,1], index: 2, kind: input, shape index: {}]   ;;  %s719_s3 = inlined_call_operand.hbm [shape: f32[2,4,16], index: 3, kind: output, shape index: {}]  }
   0x1   :  { %10 = vsyncpa [#allocation4 + $0x1], 0  ;;  %s597_s12 = smov 0   ;;  %s599_s13 = smov 0  }
   0x2   :  { %s601_s14 = smov 0   ;;  %s603_s15 = smov 0  }
   0x3   :  { %s605_s16 = smov 0   ;;  %s607_s17 = smov 0  }
   0x4 LB: > { %s409_s18 = sadd.s32 4294967295, %s565_s17   ;;  %s410_s19 = sadd.s32 4294967294, %s565_s17   ;;  %s565_s17 = sphi %s607_s17, %s16_s17   ;;  %s561_s16 = sphi %s605_s16, %s726_s16   ;;  %s557_s15 = sphi %s603_s15, %s725_s15   ;;  %s553_s14 = sphi %s601_s14, %s724_s14   ;;  %s549_s13 = sphi %s599_s13, %s723_s13   ;;  %s545_s12 = sphi %s597_s12, %s722_s12  }
   0x5   : > { %s28_s20 = sadd.s32 1, %s561_s16  ;;  %s107_s21 = sadd.s32 1, %s553_s14 }
   0x6   : > { %p30_p0 = scmp.ge.s32.totalorder %s28_s20, 2  ;;  %p117_p1 = scmp.ne.s32.totalorder %s553_s14, %s549_s13 }
   0x7   : > { %p118_p2 = scmp.eq.s32.totalorder %s409_s18, 1  ;;  %p123_p3 = scmp.ne.s32.totalorder %s549_s13, %s545_s12 }
   0x8   : > { %s728_s20 = smov (%p30_p0, %s28_s20), 0  ;;  %p124_p5 = scmp.eq.s32.totalorder %s410_s19, 1 }
   0x9   : > { %p637_p4 = por %p118_p2, %p117_p1  ;;  %s102_s23 = ssub.s32 %s561_s16, %s728_s20 }
   0xa   : > { %p413_p6 = scmp.ge.s32.totalorder %s565_s17, 1  ;;  %p105_p7 = scmp.eq.s32.totalorder %s102_s23, 0 }
   0xb   : > { %p644_p8 = por %p124_p5, %p123_p3  ;;  %p158_p9 = scmp.lt.s32.totalorder %s565_s17, 3 }
   0xc   : > { %s650_s25 = scalar_select %p105_p7, %s553_s14, %s107_s21  }
   0xd   : > { %p159_p10 = pnand %p413_p6, %p158_p9 }
   0xe   : > { %p184_p11 = scmp.lt.s32.totalorder (!%p159_p10), %s557_s15, 1  ;;  %s567_s4 = smov (!%p159_p10), 1  }
   0xf   : > { %162 = sbr.rel (%p159_p10) target bundleno = 926 (0x39e), region = 32  ;;  %s568_s5 = smov (!%p159_p10), 2  }
  0x10   : > { %s569_s6 = smov (!%p159_p10), 4   ;;  %s570_s7 = smov (!%p159_p10), 8  }
  0x11   : > { %s573_s8 = smov (!%p159_p10), 16   ;;  %s574_s19 = smov (!%p159_p10), 32  }
  0x12   : > { %s575_s21 = smov (!%p159_p10), 64   ;;  %s181_s23 = sand.u32 (!%p159_p10), 1, %s549_s13  }
  0x14   : > { %s185_s26 = scalar_select %p184_p11, %s557_s15, 1  ;;  %vm198_vm0 = vcmask 1043456   ;;  %vm214_vm1 = vcmask 1040384   ;;  %v216_v17 = vlaneseq  ;;  %vm195_vm5 = vcmask 1024   ;;  %v298_v34 = vld [vmem:[%s717_s1] sm:$0xf] }
  0x15   : > { %v571_v28 = vmov 0   ;;  %v572_v29 = vmov 0.0   ;;  %v299_v35 = vld [vmem:[%s718_s2] sm:$0xf]  ;;  %vm274_vm9 = vcmask 1041408  }
  0x16   : > { %s415_s27 = sshll.u32 %s185_s26, 2  ;;  %v217_v18 = vand.u32 127, %v216_v17  ;;  %484 = vset.pattern.permute.xlu0 %v571_v28  ;;  %196 = vst.msk [vmem:[#allocation2] sm:$0x3] %vm195_vm5, %v572_v29  ;;  %v301_v58 = vshrl.u32 %v216_v17, 7  ;;  %s414_s26 = sshll.u32 %s181_s23, 2 }
  0x17   : > { %s190_s30 = scalar_lea.vmem %s716_s0, %s415_s27  ;;  %s417_s27 = sshll.u32 %s557_s15, 6 }
  0x18   : > { %v657_v0 = vld [vmem:[%s190_s30] sm:$0xf]  ;;  %vm218_vm2 = vcmp.ge.s32.totalorder %v217_v18, 1  ;;  %vm225_vm3 = vcmp.ge.s32.totalorder %v217_v18, 2  ;;  %vm232_vm4 = vcmp.ge.s32.totalorder %v217_v18, 4  ;;  %vm239_vm6 = vcmp.ge.s32.totalorder %v217_v18, 8 }
  0x19   : > { %v199_v1 = vsel %vm198_vm0, %v657_v0, 0.0  ;;  %v206_v2 = vmul.f32 %v657_v0, %v657_v0  ;;  %vm246_vm7 = vcmp.ge.s32.totalorder %v217_v18, 16  ;;  %vm253_vm8 = vcmp.ge.s32.totalorder %v217_v18, 32  ;;  %s183_s28 = scalar_lea.vmem [#allocation3], %s414_s26 }
  0x1a   : > { %v200_v3 = vrot.slane %v199_v1, 4  ;;  %v284_v43 = vadd.s32 1, %v217_v18  ;;  %vm260_vm10 = vcmp.ge.s32.totalorder %v217_v18, 64  ;;  %v302_v59 = vsub.s32 0, %v301_v58  ;;  %s338_s29 = sshll.u32 %s183_s28, 4  ;;  %s339_s29 = int_to_ptr.vmem [resolvable:$true] %s338_s29 }
  0x1b   : > { %v207_v4 = vsel %vm198_vm0, %v206_v2, 0.0  ;;  %v307_v61 = vsub.s32 1, %v301_v58 }
  0x1c   : > { %v201_v5 = vadd.f32 %v200_v3, %v199_v1  ;;  %v208_v6 = vrot.slane %v207_v4, 4  ;;  %v285_v44 = vcvt.s32.f32 %v284_v43 }
  0x1d   : > { %v664_v33 = vld [vmem:[#allocation2] sm:$0x3] }
  0x1e   : > { %v202_v7 = vrot.slane %v201_v5, 2  ;;  %v209_v8 = vadd.f32 %v208_v6, %v207_v4  ;;  %v286_v45 = vmul.f32 4.0, %v285_v44 }
  0x20   : > { %v203_v9 = vadd.f32 %v202_v7, %v201_v5  ;;  %v210_v10 = vrot.slane %v209_v8, 2  ;;  %485 = vrcp.f32 %v286_v45 }
  0x22   : > { %v204_v11 = vrot.slane %v203_v9, 1  ;;  %v211_v12 = vadd.f32 %v210_v10, %v209_v8 }
  0x24   : > { %v205_v13 = vadd.f32 %v204_v11, %v203_v9  ;;  %v212_v14 = vrot.slane %v211_v12, 1 }
  0x26   : > { %v213_v15 = vadd.f32 %v212_v14, %v211_v12 }
  0x28   : > { %v215_v16 = vsel %vm214_vm1, %v205_v13, %v213_v15 }
  0x29   : > { %219 = vrot.lane.b32.xlu0 %v215_v16, %s567_s4  ;;  %v275_v42 = vsel %vm274_vm9, %v215_v16, 0.0 }
  0x2d   : > { %v486_v50 = vpop.eup %485 }
  0x9b   : > { %v220_v19 = vpop.permute.xlu0 %219 }
  0x9c   : > { %v223_v20 = vsel %vm218_vm2, %v220_v19, 0.0 }
  0x9d   : > { %v224_v21 = vadd.f32 %v223_v20, %v215_v16 }
  0x9f   : > { %226 = vrot.lane.b32.xlu0 %v224_v21, %s568_s5  ;;  %s336_s5 = scalar_lea.hbm %s719_s3, %s417_s27 }
 0x111   : > { %v227_v22 = vpop.permute.xlu0 %226 }
 0x112   : > { %v230_v23 = vsel %vm225_vm3, %v227_v22, 0.0 }
 0x113   : > { %v231_v24 = vadd.f32 %v230_v23, %v224_v21 }
 0x115   : > { %233 = vrot.lane.b32.xlu1 %v231_v24, %s569_s6  ;;  %s324_s6 = scalar_lea.sflag [#allocation4], %s181_s23 }
 0x187   : > { %v234_v25 = vpop.permute.xlu1 %233 }
 0x188   : > { %v237_v26 = vsel %vm232_vm4, %v234_v25, 0.0 }
 0x189   : > { %v238_v27 = vadd.f32 %v237_v26, %v231_v24 }
 0x18b   : > { %240 = vrot.lane.b32.xlu1 %v238_v27, %s570_s7  ;;  %s489_s7 = scalar_lea.vmem %s339_s29, 64 }
 0x18c   : > { %p490_p12 = scmp.ne.s32.totalorder %s339_s29, %s489_s7 }
 0x18e   : > { %p491_p13 = pnand %p490_p12, %p637_p4 }
 0x190   : > { %p492_p0 = pneg %p491_p13 }
 0x1fd   : > { %v241_v30 = vpop.permute.xlu1 %240 }
 0x1fe   : > { %v244_v31 = vsel %vm239_vm6, %v241_v30, 0.0 }
 0x1ff   : > { %v245_v32 = vadd.f32 %v244_v31, %v238_v27 }
 0x201   : > { %247 = vrot.lane.b32.xlu0 %v245_v32, %s573_s8  ;;  %s576_s8 = smov [#allocation3]  }
 0x202   : > { %s493_s9 = sshll.u32 %s576_s8, 4  ;;  %s494_s9 = int_to_ptr.vmem [resolvable:$false] %s493_s9 }
 0x203   : > { %s495_s15 = scalar_lea.vmem %s494_s9, 128  ;;  %p496_p1 = scmp.lt.s32.totalorder %s339_s29, %s494_s9 }
 0x204   : > { %p497_p2 = scmp.lt.s32.totalorder %s495_s15, %s489_s7 }
 0x205   : > { %270 = vperm.xlu0 %484, %v664_v33  }
 0x206   : > { %p498_p3 = por %p497_p2, %p496_p1 }
 0x208   : > { %p499_p5 = pnand %p498_p3, %p492_p0 }
 0x209   : > { %312 = vperm.xlu0 %484, %v298_v34  }
 0x20d   : > { %318 = vperm.xlu0 %484, %v299_v35  }
 0x273   : > { %v248_v36 = vpop.permute.xlu0 %247 }
 0x274   : > { %v251_v37 = vsel %vm246_vm7, %v248_v36, 0.0 }
 0x275   : > { %v252_v38 = vadd.f32 %v251_v37, %v245_v32 }
 0x277   : > { %254 = vrot.lane.b32.xlu1 %v252_v38, %s574_s19 }
 0x280   : > { %v271_v48 = vpop.permute.xlu0 %270 }
 0x284   : > { %v313_v63 = vpop.permute.xlu0 %312 }
 0x288   : > { %v319_v5 = vpop.permute.xlu0 %318 }
 0x2e9   : > { %v255_v39 = vpop.permute.xlu1 %254 }
 0x2ea   : > { %v258_v40 = vsel %vm253_vm8, %v255_v39, 0.0 }
 0x2eb   : > { %v259_v41 = vadd.f32 %v258_v40, %v252_v38 }
 0x2ed   : > { %261 = vrot.lane.b32.xlu1 %v259_v41, %s575_s21 }
 0x311   : > { %276 = vadd.xlane.f32.xlu1 %v275_v42 }
 0x35f   : > { %v262_v46 = vpop.permute.xlu1 %261 }
 0x360   : > { %v265_v47 = vsel %vm260_vm10, %v262_v46, 0.0 }
 0x361   : > { %v266_v49 = vadd.f32 %v265_v47, %v259_v41 }
 0x363   : > { %v273_v51 = vadd.f32 %v271_v48, %v266_v49 }
 0x365   : > { %v289_v52 = vmul.f32 %v486_v50, %v273_v51 }
 0x367   : > { %v290_v53 = vmul.f32 %v289_v52, %v289_v52  ;;  %v303_v60 = vrot.slane %v289_v52, %v302_v59 }
 0x369   : > { %v292_v54 = vrot.slane %v290_v53, 7  ;;  %v304_v1 = vsub.f32 %v657_v0, %v303_v60 }
 0x36b   : > { %v294_v55 = vsub.f32 %v289_v52, %v292_v54 }
 0x36d   : > { %v295_v56 = vmax.f32 %v294_v55, 0.0 }
 0x36f   : > { %v296_v57 = vadd.f32 1e-08, %v295_v56 }
 0x371   : > { %487 = vrsqrt.f32 %v296_v57 }
 0x37e   : > { %v488_v62 = vpop.eup %487 }
 0x37f   : > { %v308_v2 = vrot.slane %v488_v62, %v307_v61 }
 0x381   : > { %v309_v3 = vmul.f32 %v308_v2, %v304_v1 }
 0x383   : > { %v315_v4 = vmul.f32 %v313_v63, %v309_v3 }
 0x385   : > { %v321_v6 = vadd.f32 %v319_v5, %v315_v4 }
 0x387   : > { %322 = vst [vmem:[%s183_s28] sm:$0xf] %v321_v6 }
 0x388   : > { %502 = shalt.err (!%p499_p5)
}
 0x389   : > { %s503_s10 = scalar_lea.hbm %s336_s5, 64  ;;  %s507_s19 = scalar_lea.hbm %s719_s3, 128 }
 0x38a   : > { %p504_p6 = scmp.ne.s32.totalorder %s336_s5, %s503_s10  ;;  %p508_p10 = scmp.lt.s32.totalorder %s336_s5, %s719_s3 }
 0x38b   : > { %p509_p11 = scmp.lt.s32.totalorder %s507_s19, %s503_s10 }
 0x38c   : > { %p505_p7 = pnand %p504_p6, %p637_p4 }
 0x38d   : > { %p510_p12 = por %p509_p11, %p508_p10 }
 0x38e   : > { %p506_p9 = pneg %p505_p7 }
 0x390   : > { %p511_p13 = pnand %p510_p12, %p506_p9 }
 0x392   : > { %514 = shalt.err (!%p511_p13)
}
 0x393   : > { %420 = dma.vmem_to_hbm [thread:$0]  (%p637_p4), %s339_s29, 64, %s336_s5, %s324_s6  }
 0x39a   : > { %v277_v0 = vpop.xlane.xlu1 %276 }
 0x39b   : > { %v278_v7 = vadd.f32 %v277_v0, %v664_v33 }
 0x39d   : > { %280 = vst.msk [vmem:[#allocation2] sm:$0x3] %vm195_vm5, %v278_v7 }
 0x39e PF: > { %p426_p0 = scmp.ge.s32.totalorder %s565_s17, 2  ;;  %s350_s26 = sand.u32 1, %s545_s12  }
 0x39f   : > { %s351_s27 = scalar_lea.sflag [#allocation4], %s350_s26 }
 0x3a0   : > { %p423_p1 = pnand %p426_p0, %p644_p8 }
 0x3a2   : > { %p424_p2 = pneg %p423_p1 }
 0x3a4   : > { %540 = dma.done.wait (%p424_p2), %s351_s27, 64  }
 0x3a5   : > { %542 = vsyncadd (%p424_p2), %s351_s27, 4294967232  ;;  %s16_s17 = sadd.s32 1, %s565_s17   ;;  %s722_s12 = smov %s549_s13 }
 0x3a6   : > { %p13_p4 = scmp.ge.s32.totalorder %s16_s17, 4   ;;  %s723_s13 = smov %s553_s14 }
 0x3a7   : > { %s724_s14 = smov %s650_s25  ;;  %s725_s15 = smov %s561_s16 }
 0x3a8   : > { %s726_s16 = smov %s728_s20  ;;  %15 = sbr.rel (!%p13_p4) target bundleno = 4 (0x4), region = 71 }
 0x3ad   :  { %356 = vsyncpa [#allocation4], 1 }
 0x3ae   :  { %358 = vsyncpa [#allocation4 + $0x1], 1 }

</bundles_post_ra>
